<compile_context>
chip_gen: v6e
topology: v6e:2x2x1
jax: 0.10.0
libtpu: 0.0.40
codegen_flags: <defaults>
</compile_context>

<pallas_src>
import numpy as np
import jax
import jax.numpy as jnp
from jax.experimental import pallas as pl
from jax.experimental.pallas import tpu as pltpu

# FastKAN defaults, with grid_min / grid_max taken from the module spec.
GRID_MIN = -1.0
GRID_MAX = 1.0
NUM_GRIDS = 8
LN_EPS = 1e-5
_GRID = np.linspace(GRID_MIN, GRID_MAX, NUM_GRIDS).astype(np.float32)
_INV_DENOM = float((NUM_GRIDS - 1) / (GRID_MAX - GRID_MIN))  # 1 / denominator


def _round_up(x, m):
    return ((x + m - 1) // m) * m


def _pick_block_b(batch):
    """Rows per grid step: small batch -> one tile; large batch -> >=2 tiles
    (v7x megacore) of up to 1024 rows (v5e/v6e step-overhead amortization)."""
    b8 = _round_up(batch, 8)
    if b8 <= 256:
        return b8
    return min(1024, _round_up((b8 + 1) // 2, 8))


def _fastkan_layer(x, ln_w, ln_b, centers, spline_w, base_w, base_b, urep_ref):
    """One FastKANLayer on a (TB, D) f32 tile.

    spline_w is (G*D, O) grid-major (row g*D + d); base_w is (D, O);
    centers is (1, G*D) with centers[0, g*D + d] = grid[g];
    urep_ref is a (TB, G*D) VMEM scratch used to build the lane-dense RBF input.
    """
    D = x.shape[-1]
    # LayerNorm (biased variance, affine, eps inside rsqrt).
    mu = jnp.mean(x, axis=-1, keepdims=True)
    xc = x - mu
    var = jnp.mean(xc * xc, axis=-1, keepdims=True)
    u = xc * jax.lax.rsqrt(var + LN_EPS) * ln_w + ln_b
    # Base update path uses the *raw* x (matches FastKANLayer.forward).
    acc = jnp.dot(x * jax.nn.sigmoid(x), base_w,
                  preferred_element_type=jnp.float32) + base_b
    # Fused lane-dense RBF spline path: replicate u across the G grid slots
    # (grid-major), then ONE exp over the full (TB, G*D) slab and ONE deep
    # matmul against the grid-major spline weight.
    for g in range(NUM_GRIDS):
        urep_ref[:, g * D:(g + 1) * D] = u          # static lane-slice stores
    z = (urep_ref[...] - centers) * _INV_DENOM
    phi = jnp.exp(-(z * z))
    acc = acc + jnp.dot(phi, spline_w, preferred_element_type=jnp.float32)
    return acc


def fastkan_kernel(x_ref,
                   ln1_w_ref, ln1_b_ref, c1_ref, sw1_ref, bw1_ref, bb1_ref,
                   ln2_w_ref, ln2_b_ref, c2_ref, sw2_ref, bw2_ref, bb2_ref,
                   o_ref,
                   urep1_ref, urep2_ref):
    h = _fastkan_layer(x_ref[...], ln1_w_ref[...], ln1_b_ref[...], c1_ref[...],
                       sw1_ref[...], bw1_ref[...], bb1_ref[...], urep1_ref)
    y = _fastkan_layer(h, ln2_w_ref[...], ln2_b_ref[...], c2_ref[...],
                       sw2_ref[...], bw2_ref[...], bb2_ref[...], urep2_ref)
    o_ref[...] = y.astype(o_ref.dtype)


def parametrization_network_fastkan(x, params):
    """x: (B, koopman_dim) f32.  params: kernel-layout FastKAN parameters.
    Returns (B, latent_dim) f32."""
    (ln1_w, ln1_b, sw1, bw1, bb1,
     ln2_w, ln2_b, sw2, bw2, bb2) = params

    B, K = x.shape
    H = bw1.shape[1]
    L = bw2.shape[1]
    G = NUM_GRIDS

    # --- batch tiling: x / out pipelined over the grid, weights resident ---
    TB = _pick_block_b(B)
    B_pad = _round_up(B, TB)
    if B_pad != B:
        x = jnp.pad(x, ((0, B_pad - B), (0, 0)))

    # LN / bias params as (1, D) rows for broadcast adds inside the kernel.
    ln1_w2 = ln1_w.reshape(1, K)
    ln1_b2 = ln1_b.reshape(1, K)
    ln2_w2 = ln2_w.reshape(1, H)
    ln2_b2 = ln2_b.reshape(1, H)
    bb1_2 = bb1.reshape(1, H)
    bb2_2 = bb2.reshape(1, L)

    # Grid-major RBF center vectors: centers[0, g*D + d] = grid[g].
    centers1 = jnp.asarray(np.repeat(_GRID, K).reshape(1, G * K))
    centers2 = jnp.asarray(np.repeat(_GRID, H).reshape(1, G * H))

    resident = lambda i: (0, 0)

    out = pl.pallas_call(
        fastkan_kernel,
        out_shape=jax.ShapeDtypeStruct((B_pad, L), x.dtype),
        grid_spec=pltpu.PrefetchScalarGridSpec(
            num_scalar_prefetch=0,
            grid=(B_pad // TB,),
            in_specs=[
                pl.BlockSpec((TB, K), lambda i: (i, 0)),   # x (pipelined)
                pl.BlockSpec((1, K), resident),            # layer1 LN weight
                pl.BlockSpec((1, K), resident),            # layer1 LN bias
                pl.BlockSpec((1, G * K), resident),        # layer1 RBF centers
                pl.BlockSpec((G * K, H), resident),        # layer1 spline W
                pl.BlockSpec((K, H), resident),            # layer1 base W
                pl.BlockSpec((1, H), resident),            # layer1 base b
                pl.BlockSpec((1, H), resident),            # layer2 LN weight
                pl.BlockSpec((1, H), resident),            # layer2 LN bias
                pl.BlockSpec((1, G * H), resident),        # layer2 RBF centers
                pl.BlockSpec((G * H, L), resident),        # layer2 spline W
                pl.BlockSpec((H, L), resident),            # layer2 base W
                pl.BlockSpec((1, L), resident),            # layer2 base b
            ],
            out_specs=pl.BlockSpec((TB, L), lambda i: (i, 0)),
            scratch_shapes=[
                pltpu.VMEM((TB, G * K), jnp.float32),      # layer1 u replicated
                pltpu.VMEM((TB, G * H), jnp.float32),      # layer2 u replicated
            ],
        ),
        compiler_params=pltpu.CompilerParams(
            dimension_semantics=("parallel",),             # v7x: shard batch
        ),
    )(x, ln1_w2, ln1_b2, centers1, sw1, bw1, bb1_2,
      ln2_w2, ln2_b2, centers2, sw2, bw2, bb2_2)

    if B_pad != B:
        out = out[:B]
    return out


# ----------------------------------------------------------------------------
# Parameter construction (mimics FastKAN defaults) + PyTorch-layout reference.
# ----------------------------------------------------------------------------
def init_fastkan_layer(key, in_dim, out_dim):
    """Params in PyTorch layout: Linear weights are (out, in)."""
    k_s, k_w, k_b = jax.random.split(key, 3)
    ln_w = jnp.ones((in_dim,), jnp.float32)
    ln_b = jnp.zeros((in_dim,), jnp.float32)
    # SplineLinear: trunc_normal(std=0.1), no bias, shape (out, in * G).
    w_spline = 0.1 * jax.random.truncated_normal(
        k_s, -2.0, 2.0, (out_dim, in_dim * NUM_GRIDS), jnp.float32)
    # base Linear: uniform +-1/sqrt(in_dim).
    bound = 1.0 / np.sqrt(in_dim)
    w_base = jax.random.uniform(k_w, (out_dim, in_dim), jnp.float32,
                                -bound, bound)
    b_base = jax.random.uniform(k_b, (out_dim,), jnp.float32, -bound, bound)
    return ln_w, ln_b, w_spline, w_base, b_base


def convert_torch_layer_params(ln_w, ln_b, w_spline, w_base, b_base):
    """PyTorch FastKANLayer params -> kernel layout.

    w_spline (out, in*G), flattened in-major / grid-minor
      -> (G*in, out), grid-major.          w_base (out, in) -> (in, out)."""
    out_dim, in_g = w_spline.shape
    in_dim = in_g // NUM_GRIDS
    sw = (w_spline.T.reshape(in_dim, NUM_GRIDS, out_dim)
          .transpose(1, 0, 2).reshape(NUM_GRIDS * in_dim, out_dim))
    return ln_w, ln_b, sw, w_base.T, b_base


def fastkan_ref(x, torch_layers):
    """Plain-JAX reference matching the PyTorch FastKAN forward."""
    grid = jnp.asarray(_GRID)
    denom = (GRID_MAX - GRID_MIN) / (NUM_GRIDS - 1)
    hi = jax.lax.Precision.HIGHEST
    for (ln_w, ln_b, w_spline, w_base, b_base) in torch_layers:
        mu = jnp.mean(x, axis=-1, keepdims=True)
        var = jnp.mean((x - mu) ** 2, axis=-1, keepdims=True)
        u = (x - mu) / jnp.sqrt(var + LN_EPS) * ln_w + ln_b
        phi = jnp.exp(-(((u[..., None] - grid) / denom) ** 2))     # (B, D, G)
        spline = jnp.dot(phi.reshape(x.shape[0], -1), w_spline.T, precision=hi)
        base = jnp.dot(x * jax.nn.sigmoid(x), w_base.T, precision=hi) + b_base
        x = spline + base
    return x


if __name__ == "__main__":
    koopman_dim, hidden_dim, latent_dim = 16, 32, 8
    batch = 8

    key = jax.random.PRNGKey(0)
    kx, k1, k2 = jax.random.split(key, 3)

    x = jax.random.normal(kx, (batch, koopman_dim), jnp.float32)
    torch_layer1 = init_fastkan_layer(k1, koopman_dim, hidden_dim)
    torch_layer2 = init_fastkan_layer(k2, hidden_dim, latent_dim)

    p1 = convert_torch_layer_params(*torch_layer1)
    p2 = convert_torch_layer_params(*torch_layer2)
    params = (*p1, *p2)

    out = jax.jit(parametrization_network_fastkan)(x, params)
    out = jax.block_until_ready(out)

    ref = fastkan_ref(x, [torch_layer1, torch_layer2])
    assert out.shape == (batch, latent_dim)
    assert jnp.allclose(out, ref, atol=1e-3, rtol=1e-3), \
        float(jnp.max(jnp.abs(out - ref)))

    print("KERNEL_OK")
</pallas_src>

<mosaic_0001>
module attributes {stable_mosaic.version = 11 : i64} {
  func.func @fastkan_kernel(%arg0: i32, %arg1: memref<8x16xf32, #tpu.memory_space<vmem>>, %arg2: memref<1x16xf32, #tpu.memory_space<vmem>>, %arg3: memref<1x16xf32, #tpu.memory_space<vmem>>, %arg4: memref<1x128xf32, #tpu.memory_space<vmem>>, %arg5: memref<128x32xf32, #tpu.memory_space<vmem>>, %arg6: memref<16x32xf32, #tpu.memory_space<vmem>>, %arg7: memref<1x32xf32, #tpu.memory_space<vmem>>, %arg8: memref<1x32xf32, #tpu.memory_space<vmem>>, %arg9: memref<1x32xf32, #tpu.memory_space<vmem>>, %arg10: memref<1x256xf32, #tpu.memory_space<vmem>>, %arg11: memref<256x8xf32, #tpu.memory_space<vmem>>, %arg12: memref<32x8xf32, #tpu.memory_space<vmem>>, %arg13: memref<1x8xf32, #tpu.memory_space<vmem>>, %arg14: memref<8x8xf32, #tpu.memory_space<vmem>>, %arg15: memref<8x128xf32, #tpu.memory_space<vmem>>, %arg16: memref<8x256xf32, #tpu.memory_space<vmem>>) attributes {dimension_semantics = [#tpu.dimension_semantics<parallel>], iteration_bounds = array<i64: 1>, scalar_prefetch = 0 : i64, scratch_operands = 2 : i64, tpu.core_type = #tpu.core_type<tc>, window_params = [{transform_indices = @transform_0, window_bounds = array<i64: 8, 16>}, {pipeline_mode = #tpu.pipeline_mode<synchronous>, transform_indices = @transform_1, window_bounds = array<i64: 1, 16>}, {pipeline_mode = #tpu.pipeline_mode<synchronous>, transform_indices = @transform_2, window_bounds = array<i64: 1, 16>}, {pipeline_mode = #tpu.pipeline_mode<synchronous>, transform_indices = @transform_3, window_bounds = array<i64: 1, 128>}, {pipeline_mode = #tpu.pipeline_mode<synchronous>, transform_indices = @transform_4, window_bounds = array<i64: 128, 32>}, {pipeline_mode = #tpu.pipeline_mode<synchronous>, transform_indices = @transform_5, window_bounds = array<i64: 16, 32>}, {pipeline_mode = #tpu.pipeline_mode<synchronous>, transform_indices = @transform_6, window_bounds = array<i64: 1, 32>}, {pipeline_mode = #tpu.pipeline_mode<synchronous>, transform_indices = @transform_7, window_bounds = array<i64: 1, 32>}, {pipeline_mode = #tpu.pipeline_mode<synchronous>, transform_indices = @transform_8, window_bounds = array<i64: 1, 32>}, {pipeline_mode = #tpu.pipeline_mode<synchronous>, transform_indices = @transform_9, window_bounds = array<i64: 1, 256>}, {pipeline_mode = #tpu.pipeline_mode<synchronous>, transform_indices = @transform_10, window_bounds = array<i64: 256, 8>}, {pipeline_mode = #tpu.pipeline_mode<synchronous>, transform_indices = @transform_11, window_bounds = array<i64: 32, 8>}, {pipeline_mode = #tpu.pipeline_mode<synchronous>, transform_indices = @transform_12, window_bounds = array<i64: 1, 8>}, {transform_indices = @transform_13, window_bounds = array<i64: 8, 8>}]} {
    %c0 = arith.constant 0 : index
    %c0_0 = arith.constant 0 : index
    %0 = vector.load %arg1[%c0, %c0_0] : memref<8x16xf32, #tpu.memory_space<vmem>>, vector<8x16xf32>
    %c0_1 = arith.constant 0 : index
    %c0_2 = arith.constant 0 : index
    %1 = vector.load %arg2[%c0_1, %c0_2] : memref<1x16xf32, #tpu.memory_space<vmem>>, vector<1x16xf32>
    %c0_3 = arith.constant 0 : index
    %c0_4 = arith.constant 0 : index
    %2 = vector.load %arg3[%c0_3, %c0_4] : memref<1x16xf32, #tpu.memory_space<vmem>>, vector<1x16xf32>
    %c0_5 = arith.constant 0 : index
    %c0_6 = arith.constant 0 : index
    %3 = vector.load %arg4[%c0_5, %c0_6] : memref<1x128xf32, #tpu.memory_space<vmem>>, vector<1x128xf32>
    %c0_7 = arith.constant 0 : index
    %c0_8 = arith.constant 0 : index
    %4 = vector.load %arg5[%c0_7, %c0_8] : memref<128x32xf32, #tpu.memory_space<vmem>>, vector<128x32xf32>
    %c0_9 = arith.constant 0 : index
    %c0_10 = arith.constant 0 : index
    %5 = vector.load %arg6[%c0_9, %c0_10] : memref<16x32xf32, #tpu.memory_space<vmem>>, vector<16x32xf32>
    %c0_11 = arith.constant 0 : index
    %c0_12 = arith.constant 0 : index
    %6 = vector.load %arg7[%c0_11, %c0_12] : memref<1x32xf32, #tpu.memory_space<vmem>>, vector<1x32xf32>
    %cst = arith.constant dense<0.000000e+00> : vector<8xf32>
    %7 = vector.multi_reduction <add>, %0, %cst [1] : vector<8x16xf32> to vector<8xf32>
    %8 = vector.shape_cast %7 : vector<8xf32> to vector<8x1xf32>
    %cst_13 = arith.constant 1.600000e+01 : f32
    %9 = vector.broadcast %cst_13 : f32 to vector<8x1xf32>
    %10 = arith.divf %8, %9 : vector<8x1xf32>
    %11 = vector.broadcast %10 : vector<8x1xf32> to vector<8x16xf32>
    %12 = arith.subf %0, %11 : vector<8x16xf32>
    %13 = arith.mulf %12, %12 : vector<8x16xf32>
    %cst_14 = arith.constant dense<0.000000e+00> : vector<8xf32>
    %14 = vector.multi_reduction <add>, %13, %cst_14 [1] : vector<8x16xf32> to vector<8xf32>
    %15 = vector.shape_cast %14 : vector<8xf32> to vector<8x1xf32>
    %cst_15 = arith.constant 1.600000e+01 : f32
    %16 = vector.broadcast %cst_15 : f32 to vector<8x1xf32>
    %17 = arith.divf %15, %16 : vector<8x1xf32>
    %cst_16 = arith.constant 9.99999974E-6 : f32
    %18 = vector.broadcast %cst_16 : f32 to vector<8x1xf32>
    %19 = arith.addf %17, %18 : vector<8x1xf32>
    %20 = math.rsqrt %19 : vector<8x1xf32>
    %21 = vector.broadcast %20 : vector<8x1xf32> to vector<8x16xf32>
    %22 = arith.mulf %12, %21 : vector<8x16xf32>
    %23 = vector.broadcast %1 : vector<1x16xf32> to vector<8x16xf32>
    %24 = arith.mulf %22, %23 : vector<8x16xf32>
    %25 = vector.broadcast %2 : vector<1x16xf32> to vector<8x16xf32>
    %26 = arith.addf %24, %25 : vector<8x16xf32>
    %27 = arith.negf %0 : vector<8x16xf32>
    %28 = math.exp %27 : vector<8x16xf32>
    %cst_17 = arith.constant 1.000000e+00 : f32
    %29 = vector.broadcast %cst_17 : f32 to vector<8x16xf32>
    %30 = arith.addf %29, %28 : vector<8x16xf32>
    %31 = arith.divf %29, %30 : vector<8x16xf32>
    %32 = arith.mulf %0, %31 : vector<8x16xf32>
    %cst_18 = arith.constant dense<0.000000e+00> : vector<8x32xf32>
    %33 = tpu.matmul %32, %5, %cst_18 {dimension_numbers = #tpu.dot_dimension_numbers<[1], [0], [0], [1], [0, 0, 1, 1], [], []>} : vector<8x16xf32>, vector<16x32xf32>, vector<8x32xf32> -> vector<8x32xf32>
    %34 = vector.broadcast %6 : vector<1x32xf32> to vector<8x32xf32>
    %35 = arith.addf %33, %34 : vector<8x32xf32>
    %c0_19 = arith.constant 0 : index
    %c0_20 = arith.constant 0 : index
    %36 = vector.load %arg15[%c0_19, %c0_20] : memref<8x128xf32, #tpu.memory_space<vmem>>, vector<8x16xf32>
    tpu.vector_store %arg15[%c0_19, %c0_20], %26 {strides = array<i32>} : memref<8x128xf32, #tpu.memory_space<vmem>>, vector<8x16xf32>,
    %c0_21 = arith.constant 0 : index
    %c16 = arith.constant 16 : index
    %37 = vector.load %arg15[%c0_21, %c16] : memref<8x128xf32, #tpu.memory_space<vmem>>, vector<8x16xf32>
    tpu.vector_store %arg15[%c0_21, %c16], %26 {strides = array<i32>} : memref<8x128xf32, #tpu.memory_space<vmem>>, vector<8x16xf32>,
    %c0_22 = arith.constant 0 : index
    %c32 = arith.constant 32 : index
    %38 = vector.load %arg15[%c0_22, %c32] : memref<8x128xf32, #tpu.memory_space<vmem>>, vector<8x16xf32>
    tpu.vector_store %arg15[%c0_22, %c32], %26 {strides = array<i32>} : memref<8x128xf32, #tpu.memory_space<vmem>>, vector<8x16xf32>,
    %c0_23 = arith.constant 0 : index
    %c48 = arith.constant 48 : index
    %39 = vector.load %arg15[%c0_23, %c48] : memref<8x128xf32, #tpu.memory_space<vmem>>, vector<8x16xf32>
    tpu.vector_store %arg15[%c0_23, %c48], %26 {strides = array<i32>} : memref<8x128xf32, #tpu.memory_space<vmem>>, vector<8x16xf32>,
    %c0_24 = arith.constant 0 : index
    %c64 = arith.constant 64 : index
    %40 = vector.load %arg15[%c0_24, %c64] : memref<8x128xf32, #tpu.memory_space<vmem>>, vector<8x16xf32>
    tpu.vector_store %arg15[%c0_24, %c64], %26 {strides = array<i32>} : memref<8x128xf32, #tpu.memory_space<vmem>>, vector<8x16xf32>,
    %c0_25 = arith.constant 0 : index
    %c80 = arith.constant 80 : index
    %41 = vector.load %arg15[%c0_25, %c80] : memref<8x128xf32, #tpu.memory_space<vmem>>, vector<8x16xf32>
    tpu.vector_store %arg15[%c0_25, %c80], %26 {strides = array<i32>} : memref<8x128xf32, #tpu.memory_space<vmem>>, vector<8x16xf32>,
    %c0_26 = arith.constant 0 : index
    %c96 = arith.constant 96 : index
    %42 = vector.load %arg15[%c0_26, %c96] : memref<8x128xf32, #tpu.memory_space<vmem>>, vector<8x16xf32>
    tpu.vector_store %arg15[%c0_26, %c96], %26 {strides = array<i32>} : memref<8x128xf32, #tpu.memory_space<vmem>>, vector<8x16xf32>,
    %c0_27 = arith.constant 0 : index
    %c112 = arith.constant 112 : index
    %43 = vector.load %arg15[%c0_27, %c112] : memref<8x128xf32, #tpu.memory_space<vmem>>, vector<8x16xf32>
    tpu.vector_store %arg15[%c0_27, %c112], %26 {strides = array<i32>} : memref<8x128xf32, #tpu.memory_space<vmem>>, vector<8x16xf32>,
    %c0_28 = arith.constant 0 : index
    %c0_29 = arith.constant 0 : index
    %44 = vector.load %arg15[%c0_28, %c0_29] : memref<8x128xf32, #tpu.memory_space<vmem>>, vector<8x128xf32>
    %45 = vector.broadcast %3 : vector<1x128xf32> to vector<8x128xf32>
    %46 = arith.subf %44, %45 : vector<8x128xf32>
    %cst_30 = arith.constant 3.500000e+00 : f32
    %47 = vector.broadcast %cst_30 : f32 to vector<8x128xf32>
    %48 = arith.mulf %46, %47 : vector<8x128xf32>
    %49 = arith.mulf %48, %48 : vector<8x128xf32>
    %cst_31 = arith.constant 0.000000e+00 : f32
    %50 = vector.broadcast %cst_31 : f32 to vector<8x128xf32>
    %51 = arith.subf %50, %49 : vector<8x128xf32>
    %52 = math.exp %51 : vector<8x128xf32>
    %cst_32 = arith.constant dense<0.000000e+00> : vector<8x32xf32>
    %53 = tpu.matmul %52, %4, %cst_32 {dimension_numbers = #tpu.dot_dimension_numbers<[1], [0], [0], [1], [0, 0, 1, 1], [], []>} : vector<8x128xf32>, vector<128x32xf32>, vector<8x32xf32> -> vector<8x32xf32>
    %54 = arith.addf %35, %53 : vector<8x32xf32>
    %c0_33 = arith.constant 0 : index
    %c0_34 = arith.constant 0 : index
    %55 = vector.load %arg8[%c0_33, %c0_34] : memref<1x32xf32, #tpu.memory_space<vmem>>, vector<1x32xf32>
    %c0_35 = arith.constant 0 : index
    %c0_36 = arith.constant 0 : index
    %56 = vector.load %arg9[%c0_35, %c0_36] : memref<1x32xf32, #tpu.memory_space<vmem>>, vector<1x32xf32>
    %c0_37 = arith.constant 0 : index
    %c0_38 = arith.constant 0 : index
    %57 = vector.load %arg10[%c0_37, %c0_38] : memref<1x256xf32, #tpu.memory_space<vmem>>, vector<1x256xf32>
    %c0_39 = arith.constant 0 : index
    %c0_40 = arith.constant 0 : index
    %58 = vector.load %arg11[%c0_39, %c0_40] : memref<256x8xf32, #tpu.memory_space<vmem>>, vector<256x8xf32>
    %c0_41 = arith.constant 0 : index
    %c0_42 = arith.constant 0 : index
    %59 = vector.load %arg12[%c0_41, %c0_42] : memref<32x8xf32, #tpu.memory_space<vmem>>, vector<32x8xf32>
    %c0_43 = arith.constant 0 : index
    %c0_44 = arith.constant 0 : index
    %60 = vector.load %arg13[%c0_43, %c0_44] : memref<1x8xf32, #tpu.memory_space<vmem>>, vector<1x8xf32>
    %cst_45 = arith.constant dense<0.000000e+00> : vector<8xf32>
    %61 = vector.multi_reduction <add>, %54, %cst_45 [1] : vector<8x32xf32> to vector<8xf32>
    %62 = vector.shape_cast %61 : vector<8xf32> to vector<8x1xf32>
    %cst_46 = arith.constant 3.200000e+01 : f32
    %63 = vector.broadcast %cst_46 : f32 to vector<8x1xf32>
    %64 = arith.divf %62, %63 : vector<8x1xf32>
    %65 = vector.broadcast %64 : vector<8x1xf32> to vector<8x32xf32>
    %66 = arith.subf %54, %65 : vector<8x32xf32>
    %67 = arith.mulf %66, %66 : vector<8x32xf32>
    %cst_47 = arith.constant dense<0.000000e+00> : vector<8xf32>
    %68 = vector.multi_reduction <add>, %67, %cst_47 [1] : vector<8x32xf32> to vector<8xf32>
    %69 = vector.shape_cast %68 : vector<8xf32> to vector<8x1xf32>
    %cst_48 = arith.constant 3.200000e+01 : f32
    %70 = vector.broadcast %cst_48 : f32 to vector<8x1xf32>
    %71 = arith.divf %69, %70 : vector<8x1xf32>
    %cst_49 = arith.constant 9.99999974E-6 : f32
    %72 = vector.broadcast %cst_49 : f32 to vector<8x1xf32>
    %73 = arith.addf %71, %72 : vector<8x1xf32>
    %74 = math.rsqrt %73 : vector<8x1xf32>
    %75 = vector.broadcast %74 : vector<8x1xf32> to vector<8x32xf32>
    %76 = arith.mulf %66, %75 : vector<8x32xf32>
    %77 = vector.broadcast %55 : vector<1x32xf32> to vector<8x32xf32>
    %78 = arith.mulf %76, %77 : vector<8x32xf32>
    %79 = vector.broadcast %56 : vector<1x32xf32> to vector<8x32xf32>
    %80 = arith.addf %78, %79 : vector<8x32xf32>
    %81 = arith.negf %54 : vector<8x32xf32>
    %82 = math.exp %81 : vector<8x32xf32>
    %cst_50 = arith.constant 1.000000e+00 : f32
    %83 = vector.broadcast %cst_50 : f32 to vector<8x32xf32>
    %84 = arith.addf %83, %82 : vector<8x32xf32>
    %85 = arith.divf %83, %84 : vector<8x32xf32>
    %86 = arith.mulf %54, %85 : vector<8x32xf32>
    %cst_51 = arith.constant dense<0.000000e+00> : vector<8x8xf32>
    %87 = tpu.matmul %86, %59, %cst_51 {dimension_numbers = #tpu.dot_dimension_numbers<[1], [0], [0], [1], [0, 0, 1, 1], [], []>} : vector<8x32xf32>, vector<32x8xf32>, vector<8x8xf32> -> vector<8x8xf32>
    %88 = vector.broadcast %60 : vector<1x8xf32> to vector<8x8xf32>
    %89 = arith.addf %87, %88 : vector<8x8xf32>
    %c0_52 = arith.constant 0 : index
    %c0_53 = arith.constant 0 : index
    %90 = vector.load %arg16[%c0_52, %c0_53] : memref<8x256xf32, #tpu.memory_space<vmem>>, vector<8x32xf32>
    tpu.vector_store %arg16[%c0_52, %c0_53], %80 {strides = array<i32>} : memref<8x256xf32, #tpu.memory_space<vmem>>, vector<8x32xf32>,
    %c0_54 = arith.constant 0 : index
    %c32_55 = arith.constant 32 : index
    %91 = vector.load %arg16[%c0_54, %c32_55] : memref<8x256xf32, #tpu.memory_space<vmem>>, vector<8x32xf32>
    tpu.vector_store %arg16[%c0_54, %c32_55], %80 {strides = array<i32>} : memref<8x256xf32, #tpu.memory_space<vmem>>, vector<8x32xf32>,
    %c0_56 = arith.constant 0 : index
    %c64_57 = arith.constant 64 : index
    %92 = vector.load %arg16[%c0_56, %c64_57] : memref<8x256xf32, #tpu.memory_space<vmem>>, vector<8x32xf32>
    tpu.vector_store %arg16[%c0_56, %c64_57], %80 {strides = array<i32>} : memref<8x256xf32, #tpu.memory_space<vmem>>, vector<8x32xf32>,
    %c0_58 = arith.constant 0 : index
    %c96_59 = arith.constant 96 : index
    %93 = vector.load %arg16[%c0_58, %c96_59] : memref<8x256xf32, #tpu.memory_space<vmem>>, vector<8x32xf32>
    tpu.vector_store %arg16[%c0_58, %c96_59], %80 {strides = array<i32>} : memref<8x256xf32, #tpu.memory_space<vmem>>, vector<8x32xf32>,
    %c0_60 = arith.constant 0 : index
    %c128 = arith.constant 128 : index
    %94 = vector.load %arg16[%c0_60, %c128] : memref<8x256xf32, #tpu.memory_space<vmem>>, vector<8x32xf32>
    tpu.vector_store %arg16[%c0_60, %c128], %80 {strides = array<i32>} : memref<8x256xf32, #tpu.memory_space<vmem>>, vector<8x32xf32>,
    %c0_61 = arith.constant 0 : index
    %c160 = arith.constant 160 : index
    %95 = vector.load %arg16[%c0_61, %c160] : memref<8x256xf32, #tpu.memory_space<vmem>>, vector<8x32xf32>
    tpu.vector_store %arg16[%c0_61, %c160], %80 {strides = array<i32>} : memref<8x256xf32, #tpu.memory_space<vmem>>, vector<8x32xf32>,
    %c0_62 = arith.constant 0 : index
    %c192 = arith.constant 192 : index
    %96 = vector.load %arg16[%c0_62, %c192] : memref<8x256xf32, #tpu.memory_space<vmem>>, vector<8x32xf32>
    tpu.vector_store %arg16[%c0_62, %c192], %80 {strides = array<i32>} : memref<8x256xf32, #tpu.memory_space<vmem>>, vector<8x32xf32>,
    %c0_63 = arith.constant 0 : index
    %c224 = arith.constant 224 : index
    %97 = vector.load %arg16[%c0_63, %c224] : memref<8x256xf32, #tpu.memory_space<vmem>>, vector<8x32xf32>
    tpu.vector_store %arg16[%c0_63, %c224], %80 {strides = array<i32>} : memref<8x256xf32, #tpu.memory_space<vmem>>, vector<8x32xf32>,
    %c0_64 = arith.constant 0 : index
    %c0_65 = arith.constant 0 : index
    %98 = vector.load %arg16[%c0_64, %c0_65] : memref<8x256xf32, #tpu.memory_space<vmem>>, vector<8x256xf32>
    %99 = vector.broadcast %57 : vector<1x256xf32> to vector<8x256xf32>
    %100 = arith.subf %98, %99 : vector<8x256xf32>
    %cst_66 = arith.constant 3.500000e+00 : f32
    %101 = vector.broadcast %cst_66 : f32 to vector<8x256xf32>
    %102 = arith.mulf %100, %101 : vector<8x256xf32>
    %103 = arith.mulf %102, %102 : vector<8x256xf32>
    %cst_67 = arith.constant 0.000000e+00 : f32
    %104 = vector.broadcast %cst_67 : f32 to vector<8x256xf32>
    %105 = arith.subf %104, %103 : vector<8x256xf32>
    %106 = math.exp %105 : vector<8x256xf32>
    %cst_68 = arith.constant dense<0.000000e+00> : vector<8x8xf32>
    %107 = tpu.matmul %106, %58, %cst_68 {dimension_numbers = #tpu.dot_dimension_numbers<[1], [0], [0], [1], [0, 0, 1, 1], [], []>} : vector<8x256xf32>, vector<256x8xf32>, vector<8x8xf32> -> vector<8x8xf32>
    %108 = arith.addf %89, %107 : vector<8x8xf32>
    %c0_69 = arith.constant 0 : index
    %c0_70 = arith.constant 0 : index
    %109 = vector.load %arg14[%c0_69, %c0_70] : memref<8x8xf32, #tpu.memory_space<vmem>>, vector<8x8xf32>
    tpu.vector_store %arg14[%c0_69, %c0_70], %108 {strides = array<i32>} : memref<8x8xf32, #tpu.memory_space<vmem>>, vector<8x8xf32>,
    return
  }
  func.func @transform_0(%arg0: i32) -> (i32, i32) {
    %c0_i32 = arith.constant 0 : i32
    %c0_i32_0 = arith.constant 0 : i32
    return %arg0, %c0_i32 : i32, i32
  }
  func.func @transform_1(%arg0: i32) -> (i32, i32) {
    %c0_i32 = arith.constant 0 : i32
    %c0_i32_0 = arith.constant 0 : i32
    %c0_i32_1 = arith.constant 0 : i32
    return %c0_i32, %c0_i32_0 : i32, i32
  }
  func.func @transform_2(%arg0: i32) -> (i32, i32) {
    %c0_i32 = arith.constant 0 : i32
    %c0_i32_0 = arith.constant 0 : i32
    %c0_i32_1 = arith.constant 0 : i32
    return %c0_i32, %c0_i32_0 : i32, i32
  }
  func.func @transform_3(%arg0: i32) -> (i32, i32) {
    %c0_i32 = arith.constant 0 : i32
    %c0_i32_0 = arith.constant 0 : i32
    %c0_i32_1 = arith.constant 0 : i32
    return %c0_i32, %c0_i32_0 : i32, i32
  }
  func.func @transform_4(%arg0: i32) -> (i32, i32) {
    %c0_i32 = arith.constant 0 : i32
    %c0_i32_0 = arith.constant 0 : i32
    %c0_i32_1 = arith.constant 0 : i32
    return %c0_i32, %c0_i32_0 : i32, i32
  }
  func.func @transform_5(%arg0: i32) -> (i32, i32) {
    %c0_i32 = arith.constant 0 : i32
    %c0_i32_0 = arith.constant 0 : i32
    %c0_i32_1 = arith.constant 0 : i32
    return %c0_i32, %c0_i32_0 : i32, i32
  }
  func.func @transform_6(%arg0: i32) -> (i32, i32) {
    %c0_i32 = arith.constant 0 : i32
    %c0_i32_0 = arith.constant 0 : i32
    %c0_i32_1 = arith.constant 0 : i32
    return %c0_i32, %c0_i32_0 : i32, i32
  }
  func.func @transform_7(%arg0: i32) -> (i32, i32) {
    %c0_i32 = arith.constant 0 : i32
    %c0_i32_0 = arith.constant 0 : i32
    %c0_i32_1 = arith.constant 0 : i32
    return %c0_i32, %c0_i32_0 : i32, i32
  }
  func.func @transform_8(%arg0: i32) -> (i32, i32) {
    %c0_i32 = arith.constant 0 : i32
    %c0_i32_0 = arith.constant 0 : i32
    %c0_i32_1 = arith.constant 0 : i32
    return %c0_i32, %c0_i32_0 : i32, i32
  }
  func.func @transform_9(%arg0: i32) -> (i32, i32) {
    %c0_i32 = arith.constant 0 : i32
    %c0_i32_0 = arith.constant 0 : i32
    %c0_i32_1 = arith.constant 0 : i32
    return %c0_i32, %c0_i32_0 : i32, i32
  }
  func.func @transform_10(%arg0: i32) -> (i32, i32) {
    %c0_i32 = arith.constant 0 : i32
    %c0_i32_0 = arith.constant 0 : i32
    %c0_i32_1 = arith.constant 0 : i32
    return %c0_i32, %c0_i32_0 : i32, i32
  }
  func.func @transform_11(%arg0: i32) -> (i32, i32) {
    %c0_i32 = arith.constant 0 : i32
    %c0_i32_0 = arith.constant 0 : i32
    %c0_i32_1 = arith.constant 0 : i32
    return %c0_i32, %c0_i32_0 : i32, i32
  }
  func.func @transform_12(%arg0: i32) -> (i32, i32) {
    %c0_i32 = arith.constant 0 : i32
    %c0_i32_0 = arith.constant 0 : i32
    %c0_i32_1 = arith.constant 0 : i32
    return %c0_i32, %c0_i32_0 : i32, i32
  }
  func.func @transform_13(%arg0: i32) -> (i32, i32) {
    %c0_i32 = arith.constant 0 : i32
    %c0_i32_0 = arith.constant 0 : i32
    return %arg0, %c0_i32 : i32, i32
  }
}

</mosaic_0001>

<bundles_post_ra>
// kernel: parametrization_network_fastkan.1
= control target key start
LH: loop header
LB: loop body
LE: loop exit
PB: predicated region body
PF: predicated region fallthrough
CT: control target
= control target key end

     0   :  { %vm68_vm0 = vcmask 130048   ;;  %s1081_s0 = inlined_call_operand.vmem [shape: f32[8,16], index: 0, kind: input, shape index: {}]   ;;  %s1082_s1 = inlined_call_operand.vmem [shape: f32[1,16], index: 1, kind: input, shape index: {}]   ;;  %s1083_s2 = inlined_call_operand.vmem [shape: f32[1,16], index: 2, kind: input, shape index: {}]   ;;  %s1084_s3 = inlined_call_operand.vmem [shape: f32[1,128], index: 3, kind: input, shape index: {}]   ;;  %s1085_s4 = inlined_call_operand.vmem [shape: f32[128,32], index: 4, kind: input, shape index: {}]   ;;  %s1086_s5 = inlined_call_operand.vmem [shape: f32[16,32], index: 5, kind: input, shape index: {}]   ;;  %s1087_s6 = inlined_call_operand.vmem [shape: f32[1,32], index: 6, kind: input, shape index: {}]   ;;  %s1088_s7 = inlined_call_operand.vmem [shape: f32[1,32], index: 7, kind: input, shape index: {}]   ;;  %s1089_s8 = inlined_call_operand.vmem [shape: f32[1,32], index: 8, kind: input, shape index: {}]   ;;  %s1090_s9 = inlined_call_operand.vmem [shape: f32[1,256], index: 9, kind: input, shape index: {}]   ;;  %s1091_s10 = inlined_call_operand.vmem [shape: f32[256,8], index: 10, kind: input, shape index: {}]   ;;  %s1092_s11 = inlined_call_operand.vmem [shape: f32[32,8], index: 11, kind: input, shape index: {}]   ;;  %s1093_s12 = inlined_call_operand.vmem [shape: f32[1,8], index: 12, kind: input, shape index: {}]   ;;  %s1094_s13 = inlined_call_operand.hbm [shape: f32[8,8], index: 13, kind: output, shape index: {}]  }
   0x1   :  { %v45_v0 = vld [vmem:[%s1081_s0] sm:$0xff] }
   0x2   :  { %18 = vsyncpa [#allocation5], 0  ;;  %v69_v1 = vsel %vm68_vm0, %v45_v0, 0.0  ;;  %v594_v7 = vmul.f32 -1.442695, %v45_v0  ;;  %s766_s30 = smov 48  }
   0x3   :  { %70 = vadd.xlane.f32.xlu0 %v69_v1  ;;  %v592_v14 = vld [vmem:[%s1082_s1] ss:$0 sm:$0xff]  ;;  %s767_s14 = smov 16   ;;  %v768_v20 = vmov 0.0   ;;  %v66_v21 = vld [vmem:[%s1086_s5 + $0x8] sm:$0xff]  ;;  %s769_s17 = smov 32  }
   0x4   :  { %726 = vpow2.f32 %v594_v7  ;;  %v593_v16 = vld [vmem:[%s1083_s2] ss:$0 sm:$0xff]  ;;  %663 = vmatprep.subr.mxu1 %v768_v20  ;;  %705 = vmatprep.subr.mxu0 %v768_v20  ;;  %vm770_vm1 = vmmov 0   ;;  %v64_v24 = vld [vmem:[%s1085_s4 + $0x78] sm:$0xff]  ;;  %v63_v25 = vld [vmem:[%s1085_s4 + $0x70] sm:$0xff]  ;;  %s772_s24 = smov 80  }
   0x5   :  { %664 = vmatpush3.msra.mxu1 %v66_v21  ;;  %v65_v22 = vld [vmem:[%s1086_s5] sm:$0xff]  ;;  %667 = vmatprep.mubr.msk.f32.mxu1 %vm770_vm1, %v768_v20  ;;  %s771_s5 = smov 64   ;;  %v62_v26 = vld [vmem:[%s1085_s4 + $0x68] sm:$0xff]  ;;  %v60_v28 = vld [vmem:[%s1085_s4 + $0x58] sm:$0xff]  ;;  %s773_s28 = smov 96   ;;  %vm188_vm2 = vcmask 261248  }
   0x6   :  { %665 = vmatprep.subr.mxu1 %v768_v20  ;;  %713 = vmatprep.mubr.msk.f32.mxu0 %vm770_vm1, %v768_v20  ;;  %v61_v27 = vld [vmem:[%s1085_s4 + $0x60] sm:$0xff]  ;;  %v59_v29 = vld [vmem:[%s1085_s4 + $0x50] sm:$0xff]  ;;  %v58_v30 = vld [vmem:[%s1085_s4 + $0x48] sm:$0xff]  ;;  %s774_s15 = smov 112   ;;  %vm193_vm3 = vcmask 392448   ;;  %vm198_vm4 = vcmask 523648  }
   0x7   :  { %666 = vmatpush3.msra.mxu1 %v65_v22  ;;  %v57_v31 = vld [vmem:[%s1085_s4 + $0x40] sm:$0xff]  ;;  %v56_v32 = vld [vmem:[%s1085_s4 + $0x38] sm:$0xff]  ;;  %v55_v33 = vld [vmem:[%s1085_s4 + $0x30] sm:$0xff]  ;;  %vm203_vm5 = vcmask 654848   ;;  %vm208_vm6 = vcmask 786048   ;;  %vm213_vm7 = vcmask 917248  }
   0x8   :  { %670 = vmatprep.subr.mxu1 %v768_v20  ;;  %v54_v34 = vld [vmem:[%s1085_s4 + $0x28] sm:$0xff]  ;;  %v53_v35 = vld [vmem:[%s1085_s4 + $0x20] sm:$0xff]  ;;  %v52_v36 = vld [vmem:[%s1085_s4 + $0x18] sm:$0xff]  ;;  %vm218_vm8 = vcmask 1048448   ;;  %vm344_vm9 = vcmask 261120   ;;  %vm464_vm10 = vcmask 523520  }
   0x9   :  { %v51_v37 = vld [vmem:[%s1085_s4 + $0x10] sm:$0xff]  ;;  %v50_v38 = vld [vmem:[%s1085_s4 + $0x8] sm:$0xff]  ;;  %v49_v39 = vld [vmem:[%s1085_s4] sm:$0xff]  ;;  %vm469_vm11 = vcmask 785920   ;;  %vm474_vm12 = vcmask 1048320   ;;  %s775_s20 = smov [#allocation4]  }
   0xa   :  { %v597_v47 = vld [vmem:[%s1084_s3] ss:$0 sm:$0xff]  ;;  %v342_v57 = vld [vmem:[%s1092_s11 + $0x18] sm:$0xff]  ;;  %v341_v58 = vld [vmem:[%s1092_s11 + $0x10] sm:$0xff]  ;;  %s584_s3 = sshll.u32 %s775_s20, 4  ;;  %vm576_vm13 = vcmask 64512   ;;  %s585_s3 = int_to_ptr.vmem [resolvable:$true] %s584_s3 }
   0xb   :  { %706 = vmatpush3.msra.mxu0 %v342_v57  ;;  %v340_v59 = vld [vmem:[%s1092_s11 + $0x8] sm:$0xff]  ;;  %v339_v60 = vld [vmem:[%s1092_s11] sm:$0xff]  ;;  %v337_v22 = vld [vmem:[%s1091_s10 + $0xf0] sm:$0xff]  ;;  %s744_s21 = scalar_lea.vmem %s585_s3, 128  ;;  %p749_p1 = scmp.lt.s32.totalorder %s585_s3, %s585_s3 }
   0xc   :  { %707 = vmatprep.subr.mxu0 %v768_v20  ;;  %v595_v61 = vld [vmem:[%s1087_s6] ss:$0 sm:$0xff]  ;;  %p745_p0 = scmp.ne.s32.totalorder %s585_s3, %s744_s21  ;;  %p750_p2 = scmp.lt.s32.totalorder %s744_s21, %s744_s21 }
   0xd   :  { %708 = vmatpush3.msra.mxu0 %v341_v58  ;;  %v598_v21 = vld [vmem:[%s1088_s7] ss:$0 sm:$0xff] }
   0xe   :  { %709 = vmatprep.subr.mxu0 %v768_v20  ;;  %p751_p3 = por %p750_p2, %p749_p1 }
   0xf   :  { %710 = vmatpush3.msra.mxu0 %v340_v59 }
  0x10   :  { %711 = vmatprep.subr.mxu0 %v768_v20  ;;  %p752_p4 = pnand %p751_p3, %p745_p0 }
  0x11   :  { %v727_v11 = vpop.eup %726  ;;  %712 = vmatpush3.msra.mxu0 %v339_v60 }
  0x12   :  { %v100_v12 = vadd.f32 1.0, %v727_v11 }
  0x8c   :  { %v71_v2 = vpop.xlane.xlu0 %70 }
  0x8d   :  { %v73_v3 = vmul.f32 0.0625, %v71_v2 }
  0x8f   :  { %v74_v4 = vsub.f32 %v45_v0, %v73_v3 }
  0x91   :  { %v75_v5 = vmul.f32 %v74_v4, %v74_v4 }
  0x93   :  { %v76_v6 = vsel %vm68_vm0, %v75_v5, 0.0 }
  0x94   :  { %77 = vadd.xlane.f32.xlu0 %v76_v6 }
 0x11d   :  { %v78_v8 = vpop.xlane.xlu0 %77 }
 0x11e   :  { %v79_v9 = vmul.f32 0.0625, %v78_v8 }
 0x120   :  { %v80_v10 = vadd.f32 1e-05, %v79_v9 }
 0x122   :  { %728 = vrsqrt.f32 %v80_v10 }
 0x123   :  { %730 = vrcp.f32 %v100_v12 }
 0x12f   :  { %v729_v13 = vpop.eup %728 }
 0x130   :  { %v82_v15 = vmul.f32 %v729_v13, %v74_v4  ;;  %v731_v19 = vpop.eup %730 }
 0x131   :  { %v103_v23 = vmul.f32 %v731_v19, %v45_v0  ;;  %v322_v19 = vld [vmem:[%s1091_s10 + $0x78] sm:$0xff] }
 0x132   :  { %v89_v17 = vmul.f32 %v592_v14, %v82_v15 }
 0x133   :  { %668 = vmatmul.mubr.msk.f32.vlgmr.msra.gmra.mxu1 %vm68_vm0, %v103_v23 }
 0x134   :  { %v96_v18 = vadd.f32 %v593_v16, %v89_v17  ;;  %702 = vmatprep.mubr.msk.f32.mxu1 %vm770_vm1, %v768_v20  ;;  %671 = vmatpush3.msra.mxu1 %v64_v24  ;;  %v321_v24 = vld [vmem:[%s1091_s10 + $0x70] sm:$0xff] }
 0x135   :  { %672 = vmatprep.subr.mxu1 %v768_v20 }
 0x136   :  { %183 = vst.msk [vmem:[#allocation2] sm:$0xff] %vm68_vm0, %v96_v18  ;;  %195 = vrot.lane.b32.xlu0 %v96_v18, %s766_s30  ;;  %185 = vrot.lane.b32.xlu1 %v96_v18, %s767_s14 }
 0x137   :  { %673 = vmatpush3.msra.mxu1 %v63_v25  ;;  %v599_v25 = vld [vmem:[%s1089_s8] ss:$0 sm:$0xff] }
 0x138   :  { %674 = vmatprep.subr.mxu1 %v768_v20 }
 0x139   :  { %675 = vmatpush3.msra.mxu1 %v62_v26  ;;  %v336_v26 = vld [vmem:[%s1091_s10 + $0xe8] sm:$0xff] }
 0x13a   :  { %190 = vrot.lane.b32.xlu1 %v96_v18, %s769_s17  ;;  %676 = vmatprep.subr.mxu1 %v768_v20 }
 0x13b   :  { %677 = vmatpush3.msra.mxu1 %v61_v27 }
 0x13c   :  { %678 = vmatprep.subr.mxu1 %v768_v20 }
 0x13d   :  { %679 = vmatpush3.msra.mxu1 %v60_v28  ;;  %v320_v28 = vld [vmem:[%s1091_s10 + $0x68] sm:$0xff] }
 0x13e   :  { %200 = vrot.lane.b32.xlu1 %v96_v18, %s771_s5  ;;  %680 = vmatprep.subr.mxu1 %v768_v20 }
 0x13f   :  { %681 = vmatpush3.msra.mxu1 %v59_v29  ;;  %v335_v29 = vld [vmem:[%s1091_s10 + $0xe0] sm:$0xff] }
 0x140   :  { %682 = vmatprep.subr.mxu1 %v768_v20 }
 0x141   :  { %683 = vmatpush3.msra.mxu1 %v58_v30 }
 0x142   :  { %205 = vrot.lane.b32.xlu1 %v96_v18, %s772_s24  ;;  %684 = vmatprep.subr.mxu1 %v768_v20 }
 0x143   :  { %685 = vmatpush3.msra.mxu1 %v57_v31  ;;  %v319_v31 = vld [vmem:[%s1091_s10 + $0x60] sm:$0xff] }
 0x144   :  { %686 = vmatprep.subr.mxu1 %v768_v20 }
 0x145   :  { %687 = vmatpush3.msra.mxu1 %v56_v32  ;;  %v334_v32 = vld [vmem:[%s1091_s10 + $0xd8] sm:$0xff] }
 0x146   :  { %210 = vrot.lane.b32.xlu1 %v96_v18, %s773_s28  ;;  %688 = vmatprep.subr.mxu1 %v768_v20 }
 0x147   :  { %689 = vmatpush3.msra.mxu1 %v55_v33  ;;  %v318_v33 = vld [vmem:[%s1091_s10 + $0x58] sm:$0xff] }
 0x148   :  { %690 = vmatprep.subr.mxu1 %v768_v20 }
 0x149   :  { %691 = vmatpush3.msra.mxu1 %v54_v34  ;;  %v333_v34 = vld [vmem:[%s1091_s10 + $0xd0] sm:$0xff] }
 0x14a   :  { %215 = vrot.lane.b32.xlu1 %v96_v18, %s774_s15  ;;  %692 = vmatprep.subr.mxu1 %v768_v20  ;;  %v338_v18 = vld [vmem:[%s1091_s10 + $0xf8] sm:$0xff] }
 0x14b   :  { %693 = vmatpush3.msra.mxu1 %v53_v35  ;;  %628 = vmatprep.subr.mxu0 %v338_v18  ;;  %v317_v35 = vld [vmem:[%s1091_s10 + $0x50] sm:$0xff] }
 0x14c   :  { %694 = vmatprep.subr.mxu1 %v768_v20 }
 0x14d   :  { %695 = vmatpush3.msra.mxu1 %v52_v36  ;;  %v332_v36 = vld [vmem:[%s1091_s10 + $0xc8] sm:$0xff] }
 0x14e   :  { %696 = vmatprep.subr.mxu1 %v768_v20 }
 0x14f   :  { %697 = vmatpush3.msra.mxu1 %v51_v37  ;;  %v316_v37 = vld [vmem:[%s1091_s10 + $0x48] sm:$0xff] }
 0x150   :  { %698 = vmatprep.subr.mxu1 %v768_v20 }
 0x151   :  { %699 = vmatpush3.msra.mxu1 %v50_v38  ;;  %v331_v38 = vld [vmem:[%s1091_s10 + $0xc0] sm:$0xff] }
 0x152   :  { %700 = vmatprep.subr.mxu1 %v768_v20 }
 0x153   :  { %701 = vmatpush3.msra.mxu1 %v49_v39  ;;  %v315_v39 = vld [vmem:[%s1091_s10 + $0x40] sm:$0xff] }
 0x1a8   :  { %v186_v40 = vpop.permute.xlu1 %185  ;;  %v196_v42 = vpop.permute.xlu0 %195 }
 0x1a9   :  { %189 = vst.msk [vmem:[#allocation2] sm:$0xff] %vm188_vm2, %v186_v40  ;;  %v330_v40 = vld [vmem:[%s1091_s10 + $0xb8] sm:$0xff] }
 0x1ac   :  { %v191_v41 = vpop.permute.xlu1 %190 }
 0x1ad   :  { %194 = vst.msk [vmem:[#allocation2] sm:$0xff] %vm193_vm3, %v191_v41  ;;  %v314_v41 = vld [vmem:[%s1091_s10 + $0x38] sm:$0xff] }
 0x1ae   :  { %199 = vst.msk [vmem:[#allocation2] sm:$0xff] %vm198_vm4, %v196_v42  ;;  %v329_v42 = vld [vmem:[%s1091_s10 + $0xb0] sm:$0xff] }
 0x1b0   :  { %v201_v43 = vpop.permute.xlu1 %200 }
 0x1b1   :  { %204 = vst.msk [vmem:[#allocation2] sm:$0xff] %vm203_vm5, %v201_v43  ;;  %v313_v43 = vld [vmem:[%s1091_s10 + $0x30] sm:$0xff] }
 0x1b4   :  { %v206_v44 = vpop.permute.xlu1 %205 }
 0x1b5   :  { %209 = vst.msk [vmem:[#allocation2] sm:$0xff] %vm208_vm6, %v206_v44  ;;  %v328_v44 = vld [vmem:[%s1091_s10 + $0xa8] sm:$0xff] }
 0x1b8   :  { %v211_v45 = vpop.permute.xlu1 %210 }
 0x1b9   :  { %214 = vst.msk [vmem:[#allocation2] sm:$0xff] %vm213_vm7, %v211_v45  ;;  %v312_v45 = vld [vmem:[%s1091_s10 + $0x28] sm:$0xff] }
 0x1bc   :  { %v216_v46 = vpop.permute.xlu1 %215 }
 0x1bd   :  { %219 = vst.msk [vmem:[#allocation2] sm:$0xff] %vm218_vm8, %v216_v46  ;;  %v327_v46 = vld [vmem:[%s1091_s10 + $0xa0] sm:$0xff] }
 0x1c4   :  { %v220_v48 = vld [vmem:[#allocation2] sm:$0xff] }
 0x1c5   :  { %v227_v49 = vsub.f32 %v220_v48, %v597_v47  ;;  %v311_v47 = vld [vmem:[%s1091_s10 + $0x20] sm:$0xff]  ;;  %v326_v48 = vld [vmem:[%s1091_s10 + $0x98] sm:$0xff] }
 0x1c7   :  { %v228_v50 = vmul.f32 3.5, %v227_v49  ;;  %v310_v49 = vld [vmem:[%s1091_s10 + $0x18] sm:$0xff] }
 0x1c9   :  { %v229_v51 = vmul.f32 %v228_v50, %v228_v50  ;;  %v325_v50 = vld [vmem:[%s1091_s10 + $0x90] sm:$0xff] }
 0x1cb   :  { %v230_v52 = vsub.f32 0.0, %v229_v51  ;;  %v309_v51 = vld [vmem:[%s1091_s10 + $0x10] sm:$0xff] }
 0x1cd   :  { %v231_v53 = vmul.f32 1.442695, %v230_v52  ;;  %v324_v52 = vld [vmem:[%s1091_s10 + $0x88] sm:$0xff] }
 0x1cf   :  { %732 = vpow2.f32 %v231_v53  ;;  %v308_v53 = vld [vmem:[%s1091_s10 + $0x8] sm:$0xff] }
 0x1dc   :  { %v733_v54 = vpop.eup %732 }
 0x1dd   :  { %703 = vmatmul.mubr.f32.vlgmr.msra.gmra.mxu1 %v733_v54  ;;  %v323_v54 = vld [vmem:[%s1091_s10 + $0x80] sm:$0xff] }
 0x1f3   :  { %v179_v55 = vpop.f32.mrf.mxu1 }
 0x1f4   :  { %v180_v62 = vadd.f32 %v595_v61, %v179_v55  ;;  %v307_v55 = vld [vmem:[%s1091_s10] sm:$0xff] }
 0x1f5   :  { %v669_v56 = vpop.f32.mrf.mxu1 }
 0x1f6   :  { %v483_v56 = vlaneseq }
 0x1f8   :  { %v484_v59 = vshrl.u32 %v483_v56, 7 }
 0x1fa   :  { %v485_v61 = vsub.s32 0, %v484_v59 }
 0x29d   :  { %v299_v63 = vpop.f32.mrf.mxu1 }
 0x29e   :  { %v303_v0 = vadd.f32 %v299_v63, %v180_v62  ;;  %v489_v62 = vsub.s32 1, %v484_v59  ;;  %v306_v63 = vld [vmem:[%s1090_s9] sm:$0x3] }
 0x29f   :  { %v704_v1 = vpop.f32.mrf.mxu1 }
 0x2a0   :  { %v600_v2 = vmul.f32 -1.442695, %v303_v0  ;;  %v345_v3 = vsel %vm344_vm9, %v303_v0, 0.0  ;;  %v490_v1 = vrot.slane %v306_v63, %v489_v62 }
 0x2a1   :  { %346 = vadd.xlane.f32.xlu1 %v345_v3 }
 0x2a2   :  { %734 = vpow2.f32 %v600_v2 }
 0x2af   :  { %v735_v4 = vpop.eup %734 }
 0x2b0   :  { %v376_v5 = vadd.f32 1.0, %v735_v4 }
 0x2b2   :  { %736 = vrcp.f32 %v376_v5 }
 0x2bf   :  { %v737_v6 = vpop.eup %736 }
 0x2c0   :  { %v379_v7 = vmul.f32 %v737_v6, %v303_v0 }
 0x2c2   :  { %714 = vmatmul.mubr.msk.f32.vlgmr.msra.gmra.mxu0 %vm344_vm9, %v379_v7 }
 0x2c3   :  { %629 = vmatpush3.msra.mxu0 %v322_v19 }
 0x2c4   :  { %630 = vmatprep.subr.mxu0 %v337_v22 }
 0x2c5   :  { %631 = vmatpush3.msra.mxu0 %v321_v24 }
 0x2c6   :  { %632 = vmatprep.subr.mxu0 %v336_v26 }
 0x2c7   :  { %633 = vmatpush3.msra.mxu0 %v320_v28 }
 0x2c8   :  { %634 = vmatprep.subr.mxu0 %v335_v29 }
 0x2c9   :  { %635 = vmatpush3.msra.mxu0 %v319_v31 }
 0x2ca   :  { %636 = vmatprep.subr.mxu0 %v334_v32 }
 0x2cb   :  { %637 = vmatpush3.msra.mxu0 %v318_v33 }
 0x2cc   :  { %638 = vmatprep.subr.mxu0 %v333_v34 }
 0x2cd   :  { %639 = vmatpush3.msra.mxu0 %v317_v35 }
 0x2ce   :  { %640 = vmatprep.subr.mxu0 %v332_v36 }
 0x2cf   :  { %641 = vmatpush3.msra.mxu0 %v316_v37 }
 0x2d0   :  { %642 = vmatprep.subr.mxu0 %v331_v38 }
 0x2d1   :  { %643 = vmatpush3.msra.mxu0 %v315_v39 }
 0x2d2   :  { %644 = vmatprep.subr.mxu0 %v330_v40 }
 0x2d3   :  { %645 = vmatpush3.msra.mxu0 %v314_v41 }
 0x2d4   :  { %646 = vmatprep.subr.mxu0 %v329_v42 }
 0x2d5   :  { %647 = vmatpush3.msra.mxu0 %v313_v43 }
 0x2d6   :  { %648 = vmatprep.subr.mxu0 %v328_v44 }
 0x2d7   :  { %649 = vmatpush3.msra.mxu0 %v312_v45 }
 0x2d8   :  { %650 = vmatprep.subr.mxu0 %v327_v46 }
 0x2d9   :  { %651 = vmatpush3.msra.mxu0 %v311_v47 }
 0x2da   :  { %652 = vmatprep.subr.mxu0 %v326_v48 }
 0x2db   :  { %653 = vmatpush3.msra.mxu0 %v310_v49 }
 0x2dc   :  { %654 = vmatprep.subr.mxu0 %v325_v50 }
 0x2dd   :  { %655 = vmatpush3.msra.mxu0 %v309_v51 }
 0x2de   :  { %656 = vmatprep.subr.mxu0 %v324_v52 }
 0x2df   :  { %657 = vmatpush3.msra.mxu0 %v308_v53 }
 0x2e0   :  { %658 = vmatprep.subr.mxu0 %v323_v54 }
 0x2e1   :  { %659 = vmatpush3.msra.mxu0 %v307_v55 }
 0x32a   :  { %v347_v8 = vpop.xlane.xlu1 %346 }
 0x32b   :  { %v349_v9 = vmul.f32 0.03125, %v347_v8 }
 0x32d   :  { %v350_v10 = vsub.f32 %v303_v0, %v349_v9  ;;  %v486_v0 = vrot.slane %v306_v63, %v485_v61 }
 0x32f   :  { %v351_v11 = vmul.f32 %v350_v10, %v350_v10 }
 0x331   :  { %v352_v12 = vsel %vm344_vm9, %v351_v11, 0.0 }
 0x332   :  { %353 = vadd.xlane.f32.xlu0 %v352_v12 }
 0x382   :  { %v962_v13 = vpop.f32.mrf.mxu0 }
 0x384   :  { %v715_v14 = vpop.f32.mrf.mxu0 }
 0x3bb   :  { %v354_v15 = vpop.xlane.xlu0 %353 }
 0x3bc   :  { %v355_v16 = vmul.f32 0.03125, %v354_v15 }
 0x3be   :  { %v356_v17 = vadd.f32 1e-05, %v355_v16 }
 0x3c0   :  { %738 = vrsqrt.f32 %v356_v17  ;;  %v601_v17 = vld [vmem:[%s1093_s12] ss:$0 sm:$0xff] }
 0x3cd   :  { %v739_v20 = vpop.eup %738 }
 0x3ce   :  { %v358_v23 = vmul.f32 %v739_v20, %v350_v10  ;;  %v456_v20 = vadd.f32 %v601_v17, %v962_v13 }
 0x3d0   :  { %v365_v27 = vmul.f32 %v598_v21, %v358_v23 }
 0x3d2   :  { %v372_v30 = vadd.f32 %v599_v25, %v365_v27 }
 0x3d4   :  { %466 = vrot.lane.b32.xlu0 %v372_v30, %s771_s5  ;;  %459 = vst.msk [vmem:[#allocation3] sm:$0xff] %vm344_vm9, %v372_v30  ;;  %476 = vst.msk [vmem:[#allocation3 + $0x8] sm:$0xff] %vm344_vm9, %v372_v30  ;;  %461 = vrot.lane.b32.xlu1 %v372_v30, %s769_s17 }
 0x3d8   :  { %471 = vrot.lane.b32.xlu1 %v372_v30, %s773_s28 }
 0x446   :  { %v467_v57 = vpop.permute.xlu0 %466  ;;  %v462_v58 = vpop.permute.xlu1 %461 }
 0x447   :  { %465 = vst.msk [vmem:[#allocation3] sm:$0xff] %vm464_vm10, %v462_v58  ;;  %477 = vst.msk [vmem:[#allocation3 + $0x8] sm:$0xff] %vm464_vm10, %v462_v58 }
 0x448   :  { %470 = vst.msk [vmem:[#allocation3] sm:$0xff] %vm469_vm11, %v467_v57  ;;  %478 = vst.msk [vmem:[#allocation3 + $0x8] sm:$0xff] %vm469_vm11, %v467_v57 }
 0x44a   :  { %v472_v60 = vpop.permute.xlu1 %471 }
 0x44b   :  { %475 = vst.msk [vmem:[#allocation3] sm:$0xff] %vm474_vm12, %v472_v60  ;;  %479 = vst.msk [vmem:[#allocation3 + $0x8] sm:$0xff] %vm474_vm12, %v472_v60 }
 0x452   :  { %v480_v2 = vld [vmem:[#allocation3] sm:$0xff]  ;;  %v481_v3 = vld [vmem:[#allocation3 + $0x8] sm:$0xff] }
 0x453   :  { %v493_v4 = vsub.f32 %v480_v2, %v486_v0  ;;  %v494_v5 = vsub.f32 %v481_v3, %v490_v1 }
 0x455   :  { %v495_v6 = vmul.f32 3.5, %v493_v4  ;;  %v496_v7 = vmul.f32 3.5, %v494_v5 }
 0x457   :  { %v497_v8 = vmul.f32 %v495_v6, %v495_v6  ;;  %v498_v9 = vmul.f32 %v496_v7, %v496_v7 }
 0x459   :  { %v499_v10 = vsub.f32 0.0, %v497_v8  ;;  %v500_v11 = vsub.f32 0.0, %v498_v9 }
 0x45b   :  { %v501_v12 = vmul.f32 1.442695, %v499_v10  ;;  %v503_v14 = vmul.f32 1.442695, %v500_v11 }
 0x45d   :  { %740 = vpow2.f32 %v501_v12 }
 0x45e   :  { %742 = vpow2.f32 %v503_v14 }
 0x46a   :  { %v741_v15 = vpop.eup %740 }
 0x46b   :  { %v743_v16 = vpop.eup %742 }
 0x46c   :  { %569 = vmatprep.mubr.f32.mxu0 %v743_v16 }
 0x46d   :  { %570 = vmatmul.mubr.f32.vlgmr.msra.gmra.mxu0 %v741_v15 }
 0x52d   :  { %v660_v18 = vpop.f32.mrf.mxu0 }
 0x52f   :  { %v661_v19 = vpop.f32.mrf.mxu0 }
 0x530   :  { %v662_v21 = vadd.f32 %v661_v19, %v660_v18 }
 0x532   :  { %v575_v22 = vadd.f32 %v662_v21, %v456_v20 }
 0x534   :  { %577 = vst.msk [vmem:[#allocation4] sm:$0xff] %vm576_vm13, %v575_v22 }
 0x535   :  { %755 = shalt.err (!%p752_p4)
}
 0x536   :  { %587 = dma.vmem_to_hbm [thread:$0]  %s585_s3, 128, %s1094_s13, [#allocation5]  }
 0x537   :  { %764 = dma.done.wait [#allocation5], 128  }
 0x538   :  { %765 = vsyncadd [#allocation5], 4294967168 }
 0x539   :  { %591 = vsyncpa [#allocation5], 1 }

</bundles_post_ra>
